<compile_context>
chip_gen: v5e
topology: v5e:2x2
jax: 0.10.0
libtpu: 0.0.40
codegen_flags: <defaults>
</compile_context>

<pallas_src>
import functools

import jax
import jax.numpy as jnp
from jax import lax
from jax.experimental import pallas as pl
from jax.experimental.pallas import tpu as pltpu

LANES = 128        # vreg lane width (last dim of the slab)
PART_ROWS = 32     # rows per accumulation chunk inside pass 1
SMALL_ROWS = 2048  # <= this many slab rows -> single fused pallas_call


def _round_up(v, m):
    return ((v + m - 1) // m) * m


def _block_rows_max():
    """Per-generation block height (rows of 128 lanes)."""
    try:
        kind = jax.devices()[0].device_kind.lower()
    except Exception:
        return 2048
    # v7x: 3.2 TB/s HBM + 32 MiB scoped default -> bigger blocks pay off.
    return 4096 if "7" in kind else 2048


def _pow_abs(d, gamma):
    """d ** gamma (d >= 0) with cheap VPU paths for small integer exponents."""
    g = float(gamma)
    if g == 0.0:
        return jnp.ones_like(d)
    if g == int(g) and 0 < g <= 8:
        e = int(g)
        result, base = None, d
        while e:                      # exponentiation by squaring (VPU only)
            if e & 1:
                result = base if result is None else result * base
            e >>= 1
            if e:
                base = base * base
        return result
    return jnp.power(d, g)            # generic float exponent (EUP exp/log)


def _stable_bce(x, t):
    """Numerically stable BCE-with-logits: max(x,0) - x*t + log1p(exp(-|x|))."""
    return jnp.maximum(x, 0.0) - x * t + jnp.log1p(jnp.exp(-jnp.abs(x)))


# --------------------------------------------------------------------------
# Small path: one fused kernel (whole slab as a single block).
# --------------------------------------------------------------------------
def _fused_small_kernel(x_ref, t_ref, o_ref, *, scale, gamma):
    x = x_ref[...].astype(jnp.float32)
    t = t_ref[...].astype(jnp.float32)
    s = jnp.sum(_stable_bce(x, t)) * scale          # alpha / N folded in
    d = jnp.abs(t - jax.nn.sigmoid(x))
    o_ref[...] = (s * _pow_abs(d, gamma)).astype(o_ref.dtype)


# --------------------------------------------------------------------------
# Large path, pass 1: per-block BCE partial sums (ragged tail masked in-kernel).
# --------------------------------------------------------------------------
def _bce_partial_kernel(x_ref, t_ref, part_ref, *,
                        nchunks, rows_valid, block_rows, mask_tail, unroll):
    acc0 = jnp.zeros((PART_ROWS, LANES), jnp.float32)

    if mask_tail:
        base = pl.program_id(0) * block_rows
        # Hoisted out of the loop (JAX does not CSE broadcast_in_dim).
        row_iota = lax.broadcasted_iota(jnp.int32, (PART_ROWS, LANES), 0) + base

    def body(k, acc):
        lo = pl.multiple_of(k * PART_ROWS, PART_ROWS)
        x = x_ref[pl.ds(lo, PART_ROWS), :].astype(jnp.float32)
        t = t_ref[pl.ds(lo, PART_ROWS), :].astype(jnp.float32)
        bce = _stable_bce(x, t)
        if mask_tail:
            # Rows past the real row count are OOB garbage -> zero them out.
            bce = jnp.where(row_iota + lo < rows_valid, bce, 0.0)
        return acc + bce

    acc = lax.fori_loop(0, nchunks, body, acc0, unroll=unroll)

    # Fold (32,128) -> (8,128) with 3 VPU adds (4x smaller partials array).
    folded = acc[0:8, :]
    for r in range(8, PART_ROWS, 8):
        folded = folded + acc[r:r + 8, :]
    part_ref[...] = folded


# --------------------------------------------------------------------------
# Large path, pass 2: elementwise focal modulation scaled by bce_sum*alpha/N.
# --------------------------------------------------------------------------
def _focal_kernel(sum_ref, x_ref, t_ref, o_ref, *, scale, gamma):
    x = x_ref[...].astype(jnp.float32)
    t = t_ref[...].astype(jnp.float32)
    d = jnp.abs(t - jax.nn.sigmoid(x))
    s = sum_ref[0, 0] * scale                       # alpha / N folded in
    o_ref[...] = (s * _pow_abs(d, gamma)).astype(o_ref.dtype)


def focal_loss(x, target, gamma=2.0, alpha=1.0, reduction="mean"):
    assert reduction == "mean"  # module default; 'none'/'sum' not implemented
    orig_shape = x.shape
    out_dtype = x.dtype
    n = int(x.size)

    xf = x.reshape(-1)
    tf = target.reshape(-1)

    # Only the sub-128 lane remainder is ever padded.  x=100, t=1 makes the
    # stable BCE term exactly 0, so these elements never need masking.
    lane_pad = (-n) % LANES
    if lane_pad:
        xf = jnp.pad(xf, (0, lane_pad), constant_values=100.0)
        tf = jnp.pad(tf, (0, lane_pad), constant_values=1.0)
    R = (n + lane_pad) // LANES
    xp = xf.reshape(R, LANES)   # contiguous reshape: bitcast, no HBM copy
    tp = tf.reshape(R, LANES)

    scale = float(alpha) / float(n)

    if R <= SMALL_ROWS:
        # ---- single fused dispatch (dominant cost at this size is launches).
        out2d = pl.pallas_call(
            functools.partial(_fused_small_kernel, scale=scale, gamma=gamma),
            out_shape=jax.ShapeDtypeStruct((R, LANES), out_dtype),
            grid=(1,),
            in_specs=[
                pl.BlockSpec((R, LANES), lambda i: (0, 0)),
                pl.BlockSpec((R, LANES), lambda i: (0, 0)),
            ],
            out_specs=pl.BlockSpec((R, LANES), lambda i: (0, 0)),
            compiler_params=pltpu.CompilerParams(
                dimension_semantics=("arbitrary",)),
        )(xp, tp)
    else:
        # ---- two-pass streaming path for large inputs.
        bm = _block_rows_max()
        # Cap at half the rows so nb >= 2 -> both v7x TensorCores get work.
        block_rows = max(PART_ROWS,
                         min(bm, _round_up(pl.cdiv(R, 2), PART_ROWS)))
        nb = pl.cdiv(R, block_rows)
        nchunks = block_rows // PART_ROWS
        mask_tail = (R % block_rows) != 0

        partials = pl.pallas_call(
            functools.partial(_bce_partial_kernel, nchunks=nchunks,
                              rows_valid=R, block_rows=block_rows,
                              mask_tail=mask_tail,
                              unroll=min(4, nchunks)),
            out_shape=jax.ShapeDtypeStruct((nb * 8, LANES), jnp.float32),
            grid=(nb,),
            in_specs=[
                pl.BlockSpec((block_rows, LANES), lambda i: (i, 0)),
                pl.BlockSpec((block_rows, LANES), lambda i: (i, 0)),
            ],
            out_specs=pl.BlockSpec((8, LANES), lambda i: (i, 0)),
            compiler_params=pltpu.CompilerParams(
                dimension_semantics=("parallel",)),
        )(xp, tp)

        # Tiny (nb*8, 128) array: finish the reduction in plain JAX.
        bce_sum = jnp.sum(partials, dtype=jnp.float32).reshape(1, 1)

        out2d = pl.pallas_call(
            functools.partial(_focal_kernel, scale=scale, gamma=gamma),
            out_shape=jax.ShapeDtypeStruct((R, LANES), out_dtype),
            grid=(nb,),
            in_specs=[
                pl.BlockSpec((1, 1), lambda i: (0, 0),
                             memory_space=pltpu.SMEM),
                pl.BlockSpec((block_rows, LANES), lambda i: (i, 0)),
                pl.BlockSpec((block_rows, LANES), lambda i: (i, 0)),
            ],
            out_specs=pl.BlockSpec((block_rows, LANES), lambda i: (i, 0)),
            compiler_params=pltpu.CompilerParams(
                dimension_semantics=("parallel",)),
        )(bce_sum, xp, tp)

    out = out2d.reshape(-1)
    if lane_pad:
        out = out[:n]
    return out.reshape(orig_shape)


def _reference(x, target, gamma=2.0, alpha=1.0):
    x32 = x.astype(jnp.float32)
    t32 = target.astype(jnp.float32)
    bce = jnp.maximum(x32, 0.0) - x32 * t32 + jnp.log1p(jnp.exp(-jnp.abs(x32)))
    bce_mean = jnp.mean(bce)
    return bce_mean * alpha * jnp.power(jnp.abs(t32 - jax.nn.sigmoid(x32)), gamma)


if __name__ == "__main__":
    key = jax.random.PRNGKey(0)
    k1, k2, k3, k4 = jax.random.split(key, 4)

    # Small path: YOLO-style per-cell logits (B, C, H, W) -> fused kernel.
    x = jax.random.normal(k1, (2, 4, 16, 16), dtype=jnp.float32)
    target = jax.random.uniform(k2, (2, 4, 16, 16), dtype=jnp.float32)
    out = focal_loss(x, target, gamma=2.0, alpha=1.0, reduction="mean")
    out = jax.block_until_ready(out)
    ref = _reference(x, target, gamma=2.0, alpha=1.0)
    assert out.shape == x.shape and out.dtype == x.dtype
    assert jnp.allclose(out, ref, atol=1e-5, rtol=1e-5), "small-path mismatch"

    # Larger shape exercising the two-pass path with a masked ragged row tail.
    x2 = jax.random.normal(k3, (8, 16, 52, 52), dtype=jnp.float32)
    t2 = jax.random.uniform(k4, (8, 16, 52, 52), dtype=jnp.float32)
    out2 = jax.block_until_ready(focal_loss(x2, t2, gamma=2.0, alpha=1.0))
    ref2 = _reference(x2, t2, gamma=2.0, alpha=1.0)
    assert out2.shape == x2.shape
    assert jnp.allclose(out2, ref2, atol=1e-5, rtol=1e-4), "large-path mismatch"

    print("KERNEL_OK")
</pallas_src>

<mosaic_0001>
module attributes {stable_mosaic.version = 11 : i64} {
  func.func @_fused_small_kernel(%arg0: i32, %arg1: memref<16x128xf32, #tpu.memory_space<vmem>>, %arg2: memref<16x128xf32, #tpu.memory_space<vmem>>, %arg3: memref<16x128xf32, #tpu.memory_space<vmem>>) attributes {dimension_semantics = [#tpu.dimension_semantics<arbitrary>], iteration_bounds = array<i64: 1>, scalar_prefetch = 0 : i64, scratch_operands = 0 : i64, tpu.core_type = #tpu.core_type<tc>, window_params = [{pipeline_mode = #tpu.pipeline_mode<synchronous>, transform_indices = @transform_0, window_bounds = array<i64: 16, 128>}, {pipeline_mode = #tpu.pipeline_mode<synchronous>, transform_indices = @transform_1, window_bounds = array<i64: 16, 128>}, {pipeline_mode = #tpu.pipeline_mode<synchronous>, transform_indices = @transform_2, window_bounds = array<i64: 16, 128>}]} {
    %c0 = arith.constant 0 : index
    %c0_0 = arith.constant 0 : index
    %0 = vector.load %arg1[%c0, %c0_0] : memref<16x128xf32, #tpu.memory_space<vmem>>, vector<16x128xf32>
    %c0_1 = arith.constant 0 : index
    %c0_2 = arith.constant 0 : index
    %1 = vector.load %arg2[%c0_1, %c0_2] : memref<16x128xf32, #tpu.memory_space<vmem>>, vector<16x128xf32>
    %cst = arith.constant 0.000000e+00 : f32
    %2 = vector.broadcast %cst : f32 to vector<16x128xf32>
    %3 = arith.maximumf %0, %2 : vector<16x128xf32>
    %4 = arith.mulf %0, %1 : vector<16x128xf32>
    %5 = arith.subf %3, %4 : vector<16x128xf32>
    %6 = math.absf %0 : vector<16x128xf32>
    %cst_3 = arith.constant 0.000000e+00 : f32
    %7 = vector.broadcast %cst_3 : f32 to vector<16x128xf32>
    %8 = arith.subf %7, %6 : vector<16x128xf32>
    %9 = math.exp %8 : vector<16x128xf32>
    %10 = math.log1p %9 : vector<16x128xf32>
    %11 = arith.addf %5, %10 : vector<16x128xf32>
    %12 = vector.shape_cast %11 : vector<16x128xf32> to vector<1x16x128xf32>
    %cst_4 = arith.constant dense<0.000000e+00> : vector<1xf32>
    %13 = vector.multi_reduction <add>, %12, %cst_4 [1, 2] : vector<1x16x128xf32> to vector<1xf32>
    %14 = vector.shape_cast %13 : vector<1xf32> to vector<1x1x1xf32>
    %15 = vector.extract %14[0, 0, 0] : f32 from vector<1x1x1xf32>
    %cst_5 = arith.constant 4.8828125E-4 : f32
    %16 = arith.mulf %15, %cst_5 : f32
    %17 = arith.negf %0 : vector<16x128xf32>
    %18 = math.exp %17 : vector<16x128xf32>
    %cst_6 = arith.constant 1.000000e+00 : f32
    %19 = vector.broadcast %cst_6 : f32 to vector<16x128xf32>
    %20 = arith.addf %19, %18 : vector<16x128xf32>
    %21 = arith.divf %19, %20 : vector<16x128xf32>
    %22 = arith.subf %1, %21 : vector<16x128xf32>
    %23 = math.absf %22 : vector<16x128xf32>
    %24 = arith.mulf %23, %23 : vector<16x128xf32>
    %25 = vector.broadcast %16 : f32 to vector<16x128xf32>
    %26 = arith.mulf %25, %24 : vector<16x128xf32>
    %c0_7 = arith.constant 0 : index
    %c0_8 = arith.constant 0 : index
    %27 = vector.load %arg3[%c0_7, %c0_8] : memref<16x128xf32, #tpu.memory_space<vmem>>, vector<16x128xf32>
    tpu.vector_store %arg3[%c0_7, %c0_8], %26 {strides = array<i32>} : memref<16x128xf32, #tpu.memory_space<vmem>>, vector<16x128xf32>,
    return
  }
  func.func @transform_0(%arg0: i32) -> (i32, i32) {
    %c0_i32 = arith.constant 0 : i32
    %c0_i32_0 = arith.constant 0 : i32
    %c0_i32_1 = arith.constant 0 : i32
    return %c0_i32, %c0_i32_0 : i32, i32
  }
  func.func @transform_1(%arg0: i32) -> (i32, i32) {
    %c0_i32 = arith.constant 0 : i32
    %c0_i32_0 = arith.constant 0 : i32
    %c0_i32_1 = arith.constant 0 : i32
    return %c0_i32, %c0_i32_0 : i32, i32
  }
  func.func @transform_2(%arg0: i32) -> (i32, i32) {
    %c0_i32 = arith.constant 0 : i32
    %c0_i32_0 = arith.constant 0 : i32
    %c0_i32_1 = arith.constant 0 : i32
    return %c0_i32, %c0_i32_0 : i32, i32
  }
}

</mosaic_0001>

<bundles_post_ra>
// kernel: tpu_custom_call.1
= control target key start
LH: loop header
LB: loop body
LE: loop exit
PB: predicated region body
PF: predicated region fallthrough
CT: control target
= control target key end

     0   :  { %7 = vsyncpa [#allocation3], 0  ;;  %s311_s0 = inlined_call_operand.hbm [shape: f32[16,128], index: 0, kind: input, shape index: {}]   ;;  %s312_s1 = inlined_call_operand.hbm [shape: f32[16,128], index: 1, kind: input, shape index: {}]   ;;  %s313_s2 = inlined_call_operand.hbm [shape: f32[16,128], index: 2, kind: output, shape index: {}]  }
   0x1   :  { %8 = vsyncpa [#allocation6], 0 }
   0x2   :  { %9 = vsyncpa [#allocation4], 0  ;;  %s14_s11 = sshll.u32 %s311_s0, 4  ;;  %s265_s12 = smov [#allocation2]   ;;  %s15_s11 = int_to_ptr.hbm [resolvable:$true] %s14_s11 }
   0x3   :  { %s16_s13 = sshll.u32 %s265_s12, 4  ;;  %s27_s16 = sshll.u32 %s312_s1, 4  ;;  %s17_s13 = int_to_ptr.vmem [resolvable:$true] %s16_s13  ;;  %s28_s16 = int_to_ptr.hbm [resolvable:$true] %s27_s16 }
   0x4   :  { %s266_s17 = smov 128   ;;  %s267_s18 = smov 8  }
   0x5   :  { %22 = dma.hbm_to_vmem [thread:$0]  %s15_s11, 256, %s17_s13, [#allocation3], %s266_s17, %s266_s17, %s267_s18  }
   0x6   :  { %s268_s19 = smov [#allocation5]  }
   0x7   :  { %s29_s20 = sshll.u32 %s268_s19, 4  ;;  %s30_s20 = int_to_ptr.vmem [resolvable:$true] %s29_s20 }
   0x8   :  { %35 = dma.hbm_to_vmem [thread:$0]  %s28_s16, 256, %s30_s20, [#allocation6], %s266_s17, %s266_s17, %s267_s18  }
   0x9   :  { %259 = dma.done.wait [#allocation3], 256  }
   0xa   :  { %260 = vsyncadd [#allocation3], 4294967040 }
   0xb   :  { %261 = dma.done.wait [#allocation6], 256  }
   0xc   :  { %262 = vsyncadd [#allocation6], 4294967040  ;;  %v44_v0 = vld [vmem:[#allocation2] sm:$0xff]  ;;  %v45_v1 = vld [vmem:[#allocation2 + $0x8] sm:$0xff]  ;;  %s269_s21 = smov [#allocation7]   ;;  %s148_s25 = sshll.u32 %s313_s2, 4  ;;  %s149_s25 = int_to_ptr.hbm [resolvable:$true] %s148_s25 }
   0xd   :  { %v54_v2 = vand.u32 2147483647, %v44_v0  ;;  %v55_v3 = vand.u32 2147483647, %v45_v1  ;;  %v297_v12 = vld [vmem:[#allocation5] sm:$0xff]  ;;  %v299_v15 = vld [vmem:[#allocation5 + $0x8] sm:$0xff] }
   0xe   :  { %v48_v17 = vmax.f32 %v44_v0, 0.0  ;;  %v50_v18 = vmul.f32 %v297_v12, %v44_v0  ;;  %v49_v21 = vmax.f32 %v45_v1, 0.0  ;;  %v51_v22 = vmul.f32 %v299_v15, %v45_v1  ;;  %s146_s22 = sshll.u32 %s269_s21, 4  ;;  %s147_s22 = int_to_ptr.vmem [resolvable:$true] %s146_s22 }
   0xf   :  { %v56_v4 = vsub.f32 0.0, %v54_v2  ;;  %v57_v5 = vsub.f32 0.0, %v55_v3  ;;  %v162_v40 = vmul.f32 -1.442695, %v44_v0  ;;  %v163_v42 = vmul.f32 -1.442695, %v45_v1 }
  0x10   :  { %v52_v26 = vsub.f32 %v48_v17, %v50_v18  ;;  %v53_v29 = vsub.f32 %v49_v21, %v51_v22 }
  0x11   :  { %v58_v6 = vmul.f32 1.442695, %v56_v4  ;;  %v60_v7 = vmul.f32 1.442695, %v57_v5 }
  0x13   :  { %171 = vpow2.f32 %v58_v6 }
  0x14   :  { %173 = vpow2.f32 %v60_v7 }
  0x19   :  { %v172_v8 = vpop.eup %171 }
  0x1a   :  { %v174_v9 = vpop.eup %173  ;;  %v62_v10 = vadd.f32 1.0, %v172_v8  ;;  %v65_v11 = vmul.f32 -0.5, %v172_v8  ;;  %v68_v19 = vand.u32 2147483647, %v172_v8 }
  0x1b   :  { %v71_v13 = vadd.f32 1.0, %v174_v9  ;;  %v74_v14 = vmul.f32 -0.5, %v174_v9  ;;  %v77_v23 = vand.u32 2147483647, %v174_v9 }
  0x1c   :  { %175 = vlog2.f32 %v62_v10  ;;  %v66_v16 = vadd.f32 1.0, %v65_v11  ;;  %vm69_vm0 = vcmp.lt.f32.partialorder %v68_v19, 0.0004427343 }
  0x1d   :  { %177 = vlog2.f32 %v71_v13  ;;  %v75_v20 = vadd.f32 1.0, %v74_v14  ;;  %vm78_vm1 = vcmp.lt.f32.partialorder %v77_v23, 0.0004427343 }
  0x1e   :  { %v67_v24 = vmul.f32 %v172_v8, %v66_v16  ;;  %179 = vpow2.f32 %v162_v40 }
  0x1f   :  { %v76_v27 = vmul.f32 %v174_v9, %v75_v20  ;;  %181 = vpow2.f32 %v163_v42 }
  0x22   :  { %v176_v25 = vpop.eup %175 }
  0x23   :  { %v178_v28 = vpop.eup %177  ;;  %v64_v30 = vmul.f32 0.6931472, %v176_v25 }
  0x24   :  { %v73_v31 = vmul.f32 0.6931472, %v178_v28  ;;  %v180_v46 = vpop.eup %179 }
  0x25   :  { %v70_v32 = vsel %vm69_vm0, %v67_v24, %v64_v30  ;;  %v182_v47 = vpop.eup %181  ;;  %v99_v48 = vadd.f32 1.0, %v180_v46 }
  0x26   :  { %v79_v33 = vsel %vm78_vm1, %v76_v27, %v73_v31  ;;  %v80_v34 = vadd.f32 %v70_v32, %v52_v26  ;;  %v100_v49 = vadd.f32 1.0, %v182_v47 }
  0x27   :  { %v81_v35 = vadd.f32 %v79_v33, %v53_v29  ;;  %183 = vrcp.f32 %v99_v48  ;;  %vm106_vm2 = vweird.f32 %v99_v48  ;;  %v112_v58 = vand.u32 2147483648, %v99_v48 }
  0x28   :  { %185 = vrcp.f32 %v100_v49  ;;  %vm121_vm4 = vweird.f32 %v100_v49  ;;  %v127_v59 = vand.u32 2147483648, %v100_v49  ;;  %v110_v61 = vand.u32 2147483647, %v99_v48 }
  0x29   :  { %v82_v36 = vadd.f32 %v81_v35, %v80_v34  ;;  %v125_v63 = vand.u32 2147483647, %v100_v49  ;;  %v113_v0 = vor.u32 1.1754944e-38, %v112_v58 }
  0x2a   :  { %v128_v1 = vor.u32 1.1754944e-38, %v127_v59  ;;  %vm111_vm8 = vcmp.eq.f32.partialorder %v110_v61, 8.507059e+37 }
  0x2b   :  { %83 = vadd.xlane.f32.xlu0 %v82_v36  ;;  %vm126_vm9 = vcmp.eq.f32.partialorder %v125_v63, 8.507059e+37 }
  0x2d   :  { %v184_v50 = vpop.eup %183 }
  0x2e   :  { %v186_v51 = vpop.eup %185  ;;  %v102_v52 = vmul.f32 %v184_v50, %v99_v48  ;;  %vm107_vm3 = vweird.f32 %v184_v50 }
  0x2f   :  { %v117_v53 = vmul.f32 %v186_v51, %v100_v49  ;;  %vm122_vm5 = vweird.f32 %v186_v51  ;;  %vm108_vm6 = vmor %vm106_vm2, %vm107_vm3 }
  0x30   :  { %v103_v54 = vsub.f32 1.0, %v102_v52  ;;  %vm123_vm7 = vmor %vm121_vm4, %vm122_vm5 }
  0x31   :  { %v118_v55 = vsub.f32 1.0, %v117_v53 }
  0x32   :  { %v104_v56 = vmul.f32 %v184_v50, %v103_v54 }
  0x33   :  { %v119_v57 = vmul.f32 %v186_v51, %v118_v55 }
  0x34   :  { %v105_v60 = vadd.f32 %v184_v50, %v104_v56 }
  0x35   :  { %v120_v62 = vadd.f32 %v186_v51, %v119_v57 }
  0x36   :  { %v109_v2 = vsel %vm108_vm6, %v184_v50, %v105_v60 }
  0x37   :  { %v124_v3 = vsel %vm123_vm7, %v186_v51, %v120_v62  ;;  %v114_v4 = vsel %vm111_vm8, %v113_v0, %v109_v2 }
  0x38   :  { %v129_v5 = vsel %vm126_vm9, %v128_v1, %v124_v3  ;;  %v131_v6 = vsub.f32 %v297_v12, %v114_v4 }
  0x39   :  { %v132_v7 = vsub.f32 %v299_v15, %v129_v5 }
  0x3a   :  { %v133_v8 = vand.u32 2147483647, %v131_v6 }
  0x3b   :  { %v134_v9 = vand.u32 2147483647, %v132_v7 }
  0x3c   :  { %v135_v10 = vmul.f32 %v133_v8, %v133_v8 }
  0x3d   :  { %v136_v11 = vmul.f32 %v134_v9, %v134_v9 }
  0x9e   :  { %v84_v37 = vpop.xlane.xlu0 %83 }
  0x9f   :  { %v85_v38 = vrot.slane %v84_v37, 4 }
  0xa1   :  { %v86_v39 = vadd.f32 %v85_v38, %v84_v37 }
  0xa3   :  { %v87_v41 = vrot.slane %v86_v39, 2 }
  0xa5   :  { %v88_v43 = vadd.f32 %v87_v41, %v86_v39 }
  0xa7   :  { %v89_v44 = vrot.slane %v88_v43, 1 }
  0xa9   :  { %v90_v45 = vadd.f32 %v89_v44, %v88_v43 }
  0xab   :  { %164 = vpush %v90_v45 }
  0xdc   :  { %s165_s0 = spop %164 }
  0xdd   :  { %s92_s1 = smul.f32 0.00048828125, %s165_s0 }
  0xdf   :  { %v137_v13 = vstv %s92_s1 }
  0xe0   :  { %v138_v14 = vmul.f32 %v137_v13, %v135_v10  ;;  %v139_v16 = vmul.f32 %v137_v13, %v136_v11 }
  0xe2   :  { %140 = vst [vmem:[#allocation7] sm:$0xff] %v138_v14 }
  0xe3   :  { %141 = vst [vmem:[#allocation7 + $0x8] sm:$0xff] %v139_v16 }
  0xe4   :  { %154 = dma.vmem_to_hbm [thread:$0]  %s147_s22, 256, %s149_s25, [#allocation4], %s266_s17, %s266_s17, %s267_s18  }
  0xe5   :  { %263 = dma.done.wait [#allocation4], 256  }
  0xe6   :  { %264 = vsyncadd [#allocation4], 4294967040 }
  0xe7   :  { %159 = vsyncpa [#allocation3], 1 }
  0xe8   :  { %160 = vsyncpa [#allocation6], 1 }
  0xe9   :  { %161 = vsyncpa [#allocation4], 1 }

</bundles_post_ra>
